<compile_context>
chip_gen: v5e
topology: v5e:2x2
jax: 0.10.0
libtpu: 0.0.40
codegen_flags: <defaults>
</compile_context>

<pallas_src>
import jax
import jax.numpy as jnp
from jax.experimental import pallas as pl
from jax.experimental.pallas import tpu as pltpu


def _attention_fusion_kernel(m_ref, bl_ref, wm_ref, wb_ref, b_ref, v_ref, o_ref):
    # m_ref / bl_ref : (TB, S, H)  (f32 or bf16)
    # wm_ref / wb_ref: (H, H)      (W.T split into the main / blood halves)
    # b_ref / v_ref  : (1, H)      f32
    # o_ref          : (TB, H)
    TB, S, H = m_ref.shape

    m = m_ref[...]                                   # (TB, S, H)
    bl = bl_ref[...]                                 # (TB, S, H)

    # energy = tanh(main @ Wm + blood @ Wb + b)
    # Two K=H matmuls over all TB*S rows; f32 accumulation on the MXU.
    energy = jnp.tanh(
        jnp.dot(m.reshape(TB * S, H), wm_ref[...],
                preferred_element_type=jnp.float32)
        + jnp.dot(bl.reshape(TB * S, H), wb_ref[...],
                  preferred_element_type=jnp.float32)
        + b_ref[...]                                  # (1, H) broadcasts
    ).reshape(TB, S, H)                               # f32

    # scores = energy @ v — degenerate N=1 matvec: VPU broadcast-mul + XLU
    # lane reduction instead of an MXU push.
    scores = jnp.sum(energy * v_ref[...], axis=-1, keepdims=True)   # (TB, S, 1)

    # softmax over the sequence axis, per batch element (exact division).
    mx = jnp.max(scores, axis=1, keepdims=True)
    p = jnp.exp(scores - mx)
    weights = p / jnp.sum(p, axis=1, keepdims=True)                 # (TB, S, 1)

    # fused = sum_S(weights * main) — degenerate M=1 matvec: VPU broadcast-mul
    # + sublane reduction.  Lane-dense (TB, H) store.
    fused = jnp.sum(weights * m.astype(jnp.float32), axis=1)        # (TB, H)
    o_ref[...] = fused.astype(o_ref.dtype)


def _round_up(x, m):
    return (x + m - 1) // m * m


def _pick_batch_tile(B, S, H, *, in_itemsize=4,
                     vmem_budget_bytes=24 << 20, min_grid_steps=2):
    """Batch elements per grid step.

    Legal tiles: TB == B (block == full array dim, always legal) or TB a
    multiple of 8 that divides B (the (8, 128) rule on the (B, H) f32 output
    block).  The VMEM estimate uses lane/sublane-padded dims and includes the
    in-kernel f32 temporaries (energy / scores / weights), not just the
    double-buffered input blocks.  When possible keep >= `min_grid_steps`
    grid steps so the "parallel" batch axis can be sharded across
    TensorCores (v7x has 2 per chip).
    """
    H_pad = _round_up(H, 128)
    S_pad = _round_up(S, 8)
    per_elem = (2 * 2 * S_pad * H_pad * in_itemsize      # 2 inputs x 2 pipeline bufs
                + 3 * S_pad * H_pad * 4)                 # f32 temporaries
    cap = max(1, vmem_budget_bytes // per_elem)

    cands = [t for t in range(8, B + 1, 8) if B % t == 0]
    multi = [t for t in cands if t <= cap and B // t >= min_grid_steps]
    if multi:
        return max(multi)
    ok = [t for t in cands if t <= cap]
    if ok:
        return max(ok)
    if cands:
        return min(cands)      # smallest legal multiple-of-8 tile
    return B                   # no multiple-of-8 divisor: whole batch (legal)


def attention_fusion(main_features, blood_features, W, b, v, *,
                     batch_tile=None, compute_dtype=None,
                     vmem_limit_bytes=48 << 20):
    """main_features, blood_features: (B, S, H); W: (H, 2H) (nn.Linear layout);
    b: (H,); v: (H,).  Returns (B, H) in the dtype of main_features.

    compute_dtype=jnp.bfloat16 streams the inputs and W in bf16 (f32
    accumulation / post-matmul math) — ~2x less HBM traffic.
    """
    B, S, H = main_features.shape
    out_dtype = main_features.dtype

    if compute_dtype is not None:
        main_features = main_features.astype(compute_dtype)
        blood_features = blood_features.astype(compute_dtype)
        W = W.astype(compute_dtype)
    in_itemsize = jnp.dtype(main_features.dtype).itemsize

    # Split W.T into the main / blood halves in the wrapper (free, no copy in
    # the kernel, no lane-padded concat).
    Wm = W[:, :H].T                       # (H, H)
    Wb = W[:, H:].T                       # (H, H)
    b2 = b.reshape(1, H).astype(jnp.float32)
    v2 = v.reshape(1, H).astype(jnp.float32)

    if batch_tile is None:
        TB = _pick_batch_tile(B, S, H, in_itemsize=in_itemsize,
                              vmem_budget_bytes=vmem_limit_bytes // 2)
    else:
        TB = batch_tile
    assert B % TB == 0, (B, TB)
    assert TB == B or TB % 8 == 0, f"illegal batch tile {TB} for B={B}"
    grid = (B // TB,)

    out = pl.pallas_call(
        _attention_fusion_kernel,
        out_shape=jax.ShapeDtypeStruct((B, H), out_dtype),
        grid_spec=pltpu.PrefetchScalarGridSpec(
            num_scalar_prefetch=0,
            grid=grid,
            in_specs=[
                pl.BlockSpec((TB, S, H), lambda i: (i, 0, 0)),   # main
                pl.BlockSpec((TB, S, H), lambda i: (i, 0, 0)),   # blood
                pl.BlockSpec((H, H), lambda i: (0, 0)),          # W.T (main half)
                pl.BlockSpec((H, H), lambda i: (0, 0)),          # W.T (blood half)
                pl.BlockSpec((1, H), lambda i: (0, 0)),          # bias
                pl.BlockSpec((1, H), lambda i: (0, 0)),          # v
            ],
            out_specs=pl.BlockSpec((TB, H), lambda i: (i, 0)),   # lane-dense
        ),
        compiler_params=pltpu.CompilerParams(
            dimension_semantics=("parallel",),
            vmem_limit_bytes=vmem_limit_bytes),
    )(main_features, blood_features, Wm, Wb, b2, v2)
    return out


def _reference(main_features, blood_features, W, b, v):
    combined = jnp.concatenate((main_features, blood_features), axis=2)
    energy = jnp.tanh(
        jnp.einsum("bsk,hk->bsh", combined, W,
                   precision=jax.lax.Precision.HIGHEST) + b)
    scores = jnp.einsum("bsh,h->bs", energy, v,
                        precision=jax.lax.Precision.HIGHEST)
    weights = jax.nn.softmax(scores, axis=1)
    return (weights[:, :, None] * main_features).sum(axis=1)


if __name__ == "__main__":
    B, S, H = 2, 8, 32
    key = jax.random.PRNGKey(0)
    k1, k2, k3, k4, k5 = jax.random.split(key, 5)

    main_features = jax.random.normal(k1, (B, S, H), dtype=jnp.float32)
    blood_features = jax.random.normal(k2, (B, S, H), dtype=jnp.float32)

    # Deterministic parameter init (shapes from nn.Linear(2H, H) and v=(H,)).
    W = jax.random.uniform(k3, (H, 2 * H), jnp.float32,
                           minval=-1.0, maxval=1.0) / jnp.sqrt(2.0 * H)
    b = jax.random.uniform(k4, (H,), jnp.float32,
                           minval=-1.0, maxval=1.0) / jnp.sqrt(2.0 * H)
    v = jax.random.uniform(k5, (H,), dtype=jnp.float32)   # torch.rand(hidden_dim)

    ref = _reference(main_features, blood_features, W, b, v)

    # f32 path — exact softmax division, tight tolerance restored.
    out = jax.block_until_ready(
        attention_fusion(main_features, blood_features, W, b, v))
    assert out.shape == (B, H)
    assert jnp.allclose(out, ref, atol=2e-4, rtol=2e-4), (
        f"f32 path: max abs diff {jnp.max(jnp.abs(out - ref))}")

    # bf16 streaming path (f32 accumulation + f32 post-matmul math).
    out_bf16 = jax.block_until_ready(
        attention_fusion(main_features, blood_features, W, b, v,
                         compute_dtype=jnp.bfloat16))
    assert out_bf16.shape == (B, H)
    assert jnp.allclose(out_bf16, ref, atol=3e-2, rtol=3e-2), (
        f"bf16 path: max abs diff {jnp.max(jnp.abs(out_bf16 - ref))}")

    print("KERNEL_OK")
</pallas_src>

<mosaic_0001>
module attributes {stable_mosaic.version = 11 : i64} {
  func.func @_attention_fusion_kernel(%arg0: i32, %arg1: memref<2x8x32xf32, #tpu.memory_space<vmem>>, %arg2: memref<2x8x32xf32, #tpu.memory_space<vmem>>, %arg3: memref<32x32xf32, #tpu.memory_space<vmem>>, %arg4: memref<32x32xf32, #tpu.memory_space<vmem>>, %arg5: memref<1x32xf32, #tpu.memory_space<vmem>>, %arg6: memref<1x32xf32, #tpu.memory_space<vmem>>, %arg7: memref<2x32xf32, #tpu.memory_space<vmem>>) attributes {dimension_semantics = [#tpu.dimension_semantics<parallel>], iteration_bounds = array<i64: 1>, scalar_prefetch = 0 : i64, scratch_operands = 0 : i64, tpu.core_type = #tpu.core_type<tc>, window_params = [{transform_indices = @transform_0, window_bounds = array<i64: 2, 8, 32>}, {transform_indices = @transform_1, window_bounds = array<i64: 2, 8, 32>}, {pipeline_mode = #tpu.pipeline_mode<synchronous>, transform_indices = @transform_2, window_bounds = array<i64: 32, 32>}, {pipeline_mode = #tpu.pipeline_mode<synchronous>, transform_indices = @transform_3, window_bounds = array<i64: 32, 32>}, {pipeline_mode = #tpu.pipeline_mode<synchronous>, transform_indices = @transform_4, window_bounds = array<i64: 1, 32>}, {pipeline_mode = #tpu.pipeline_mode<synchronous>, transform_indices = @transform_5, window_bounds = array<i64: 1, 32>}, {transform_indices = @transform_6, window_bounds = array<i64: 2, 32>}]} {
    %c0 = arith.constant 0 : index
    %c0_0 = arith.constant 0 : index
    %c0_1 = arith.constant 0 : index
    %0 = vector.load %arg1[%c0, %c0_0, %c0_1] : memref<2x8x32xf32, #tpu.memory_space<vmem>>, vector<2x8x32xf32>
    %c0_2 = arith.constant 0 : index
    %c0_3 = arith.constant 0 : index
    %c0_4 = arith.constant 0 : index
    %1 = vector.load %arg2[%c0_2, %c0_3, %c0_4] : memref<2x8x32xf32, #tpu.memory_space<vmem>>, vector<2x8x32xf32>
    %2 = vector.shape_cast %0 : vector<2x8x32xf32> to vector<16x32xf32>
    %c0_5 = arith.constant 0 : index
    %c0_6 = arith.constant 0 : index
    %3 = vector.load %arg3[%c0_5, %c0_6] : memref<32x32xf32, #tpu.memory_space<vmem>>, vector<32x32xf32>
    %cst = arith.constant dense<0.000000e+00> : vector<16x32xf32>
    %4 = tpu.matmul %2, %3, %cst {dimension_numbers = #tpu.dot_dimension_numbers<[1], [0], [0], [1], [0, 0, 1, 1], [], []>} : vector<16x32xf32>, vector<32x32xf32>, vector<16x32xf32> -> vector<16x32xf32>
    %5 = vector.shape_cast %1 : vector<2x8x32xf32> to vector<16x32xf32>
    %c0_7 = arith.constant 0 : index
    %c0_8 = arith.constant 0 : index
    %6 = vector.load %arg4[%c0_7, %c0_8] : memref<32x32xf32, #tpu.memory_space<vmem>>, vector<32x32xf32>
    %cst_9 = arith.constant dense<0.000000e+00> : vector<16x32xf32>
    %7 = tpu.matmul %5, %6, %cst_9 {dimension_numbers = #tpu.dot_dimension_numbers<[1], [0], [0], [1], [0, 0, 1, 1], [], []>} : vector<16x32xf32>, vector<32x32xf32>, vector<16x32xf32> -> vector<16x32xf32>
    %8 = arith.addf %4, %7 : vector<16x32xf32>
    %c0_10 = arith.constant 0 : index
    %c0_11 = arith.constant 0 : index
    %9 = vector.load %arg5[%c0_10, %c0_11] : memref<1x32xf32, #tpu.memory_space<vmem>>, vector<1x32xf32>
    %10 = vector.broadcast %9 : vector<1x32xf32> to vector<16x32xf32>
    %11 = arith.addf %8, %10 : vector<16x32xf32>
    %12 = math.tanh %11 : vector<16x32xf32>
    %13 = vector.shape_cast %12 : vector<16x32xf32> to vector<2x8x32xf32>
    %c0_12 = arith.constant 0 : index
    %c0_13 = arith.constant 0 : index
    %14 = vector.load %arg6[%c0_12, %c0_13] : memref<1x32xf32, #tpu.memory_space<vmem>>, vector<1x32xf32>
    %15 = vector.shape_cast %14 : vector<1x32xf32> to vector<1x1x32xf32>
    %16 = vector.broadcast %15 : vector<1x1x32xf32> to vector<2x8x32xf32>
    %17 = arith.mulf %13, %16 : vector<2x8x32xf32>
    %cst_14 = arith.constant dense<0.000000e+00> : vector<2x8xf32>
    %18 = vector.multi_reduction <add>, %17, %cst_14 [2] : vector<2x8x32xf32> to vector<2x8xf32>
    %19 = vector.shape_cast %18 : vector<2x8xf32> to vector<2x8x1xf32>
    %cst_15 = arith.constant dense<0xFF800000> : vector<2x1xf32>
    %20 = vector.multi_reduction <maximumf>, %19, %cst_15 [1] : vector<2x8x1xf32> to vector<2x1xf32>
    %21 = vector.shape_cast %20 : vector<2x1xf32> to vector<2x1x1xf32>
    %22 = vector.broadcast %21 : vector<2x1x1xf32> to vector<2x8x1xf32>
    %23 = arith.subf %19, %22 : vector<2x8x1xf32>
    %24 = math.exp %23 : vector<2x8x1xf32>
    %cst_16 = arith.constant dense<0.000000e+00> : vector<2x1xf32>
    %25 = vector.multi_reduction <add>, %24, %cst_16 [1] : vector<2x8x1xf32> to vector<2x1xf32>
    %26 = vector.shape_cast %25 : vector<2x1xf32> to vector<2x1x1xf32>
    %27 = vector.broadcast %26 : vector<2x1x1xf32> to vector<2x8x1xf32>
    %28 = arith.divf %24, %27 : vector<2x8x1xf32>
    %29 = vector.broadcast %28 : vector<2x8x1xf32> to vector<2x8x32xf32>
    %30 = arith.mulf %29, %0 : vector<2x8x32xf32>
    %cst_17 = arith.constant dense<0.000000e+00> : vector<2x32xf32>
    %31 = vector.multi_reduction <add>, %30, %cst_17 [1] : vector<2x8x32xf32> to vector<2x32xf32>
    %c0_18 = arith.constant 0 : index
    %c0_19 = arith.constant 0 : index
    %32 = vector.load %arg7[%c0_18, %c0_19] : memref<2x32xf32, #tpu.memory_space<vmem>>, vector<2x32xf32>
    tpu.vector_store %arg7[%c0_18, %c0_19], %31 {strides = array<i32>} : memref<2x32xf32, #tpu.memory_space<vmem>>, vector<2x32xf32>,
    return
  }
  func.func @transform_0(%arg0: i32) -> (i32, i32, i32) {
    %c0_i32 = arith.constant 0 : i32
    %c0_i32_0 = arith.constant 0 : i32
    %c0_i32_1 = arith.constant 0 : i32
    return %arg0, %c0_i32, %c0_i32_0 : i32, i32, i32
  }
  func.func @transform_1(%arg0: i32) -> (i32, i32, i32) {
    %c0_i32 = arith.constant 0 : i32
    %c0_i32_0 = arith.constant 0 : i32
    %c0_i32_1 = arith.constant 0 : i32
    return %arg0, %c0_i32, %c0_i32_0 : i32, i32, i32
  }
  func.func @transform_2(%arg0: i32) -> (i32, i32) {
    %c0_i32 = arith.constant 0 : i32
    %c0_i32_0 = arith.constant 0 : i32
    %c0_i32_1 = arith.constant 0 : i32
    return %c0_i32, %c0_i32_0 : i32, i32
  }
  func.func @transform_3(%arg0: i32) -> (i32, i32) {
    %c0_i32 = arith.constant 0 : i32
    %c0_i32_0 = arith.constant 0 : i32
    %c0_i32_1 = arith.constant 0 : i32
    return %c0_i32, %c0_i32_0 : i32, i32
  }
  func.func @transform_4(%arg0: i32) -> (i32, i32) {
    %c0_i32 = arith.constant 0 : i32
    %c0_i32_0 = arith.constant 0 : i32
    %c0_i32_1 = arith.constant 0 : i32
    return %c0_i32, %c0_i32_0 : i32, i32
  }
  func.func @transform_5(%arg0: i32) -> (i32, i32) {
    %c0_i32 = arith.constant 0 : i32
    %c0_i32_0 = arith.constant 0 : i32
    %c0_i32_1 = arith.constant 0 : i32
    return %c0_i32, %c0_i32_0 : i32, i32
  }
  func.func @transform_6(%arg0: i32) -> (i32, i32) {
    %c0_i32 = arith.constant 0 : i32
    %c0_i32_0 = arith.constant 0 : i32
    return %arg0, %c0_i32 : i32, i32
  }
}

</mosaic_0001>

<bundles_post_ra>
// kernel: tpu_custom_call.1
= control target key start
LH: loop header
LB: loop body
LE: loop exit
PB: predicated region body
PF: predicated region fallthrough
CT: control target
= control target key end

     0   :  { %11 = vsyncpa [#allocation3], 0  ;;  %s520_s0 = inlined_call_operand.hbm [shape: f32[2,8,32], index: 0, kind: input, shape index: {}]   ;;  %s521_s1 = inlined_call_operand.hbm [shape: f32[2,8,32], index: 1, kind: input, shape index: {}]   ;;  %s522_s2 = inlined_call_operand.hbm [shape: f32[32,32], index: 2, kind: input, shape index: {}]   ;;  %s523_s3 = inlined_call_operand.hbm [shape: f32[32,32], index: 3, kind: input, shape index: {}]   ;;  %s524_s4 = inlined_call_operand.vmem [shape: f32[1,32], index: 4, kind: input, shape index: {}]   ;;  %s525_s5 = inlined_call_operand.vmem [shape: f32[1,32], index: 5, kind: input, shape index: {}]   ;;  %s526_s6 = inlined_call_operand.hbm [shape: f32[2,32], index: 6, kind: output, shape index: {}]  }
   0x1   :  { %12 = vsyncpa [#allocation6], 0 }
   0x2   :  { %13 = vsyncpa [#allocation9], 0 }
   0x3   :  { %14 = vsyncpa [#allocation4], 0  ;;  %s32_s23 = sshll.u32 %s521_s1, 4  ;;  %s441_s24 = smov [#allocation5]   ;;  %s33_s23 = int_to_ptr.hbm [resolvable:$true] %s32_s23 }
   0x4   :  { %s34_s25 = sshll.u32 %s441_s24, 4  ;;  %s19_s28 = sshll.u32 %s520_s0, 4  ;;  %s35_s25 = int_to_ptr.vmem [resolvable:$true] %s34_s25  ;;  %s20_s28 = int_to_ptr.hbm [resolvable:$true] %s19_s28 }
   0x5   :  { %s442_s29 = smov 128   ;;  %s443_s30 = smov 8  }
   0x6   :  { %40 = dma.hbm_to_vmem [thread:$0]  %s33_s23, 256, %s35_s25, [#allocation6], %s442_s29, %s442_s29, %s443_s30  }
   0x7   :  { %s444_s7 = smov [#allocation2]   ;;  %s45_s11 = sshll.u32 %s522_s2, 4  ;;  %s46_s11 = int_to_ptr.hbm [resolvable:$true] %s45_s11 }
   0x8   :  { %s21_s8 = sshll.u32 %s444_s7, 4  ;;  %s58_s13 = sshll.u32 %s523_s3, 4  ;;  %s22_s8 = int_to_ptr.vmem [resolvable:$true] %s21_s8  ;;  %s59_s13 = int_to_ptr.hbm [resolvable:$true] %s58_s13 }
   0x9   :  { %27 = dma.hbm_to_vmem [thread:$0]  %s20_s28, 256, %s22_s8, [#allocation3], %s442_s29, %s442_s29, %s443_s30  }
   0xa   :  { %s445_s14 = smov [#allocation7]   ;;  %s446_s0 = smov [#allocation8]  }
   0xb   :  { %s47_s15 = sshll.u32 %s445_s14, 4  ;;  %s60_s16 = sshll.u32 %s446_s0, 4  ;;  %s48_s15 = int_to_ptr.vmem [resolvable:$true] %s47_s15  ;;  %s61_s16 = int_to_ptr.vmem [resolvable:$true] %s60_s16 }
   0xc   :  { %53 = dma.hbm_to_vmem [thread:$0]  %s46_s11, 512, %s48_s15, [#allocation6], %s442_s29, %s442_s29, %s443_s30  }
   0xd   :  { %66 = dma.hbm_to_vmem [thread:$0]  %s59_s13, 512, %s61_s16, [#allocation9], %s442_s29, %s442_s29, %s443_s30  }
   0xe   :  { %433 = dma.done.wait [#allocation3], 256  }
   0xf   :  { %434 = vsyncadd [#allocation3], 4294967040 }
  0x10   :  { %435 = dma.done.wait [#allocation6], 768  }
  0x11   :  { %436 = vsyncadd [#allocation6], 4294966528 }
  0x12   :  { %437 = dma.done.wait [#allocation9], 512  }
  0x13   :  { %438 = vsyncadd [#allocation9], 4294966784  ;;  %v98_v0 = vld [vmem:[#allocation8 + $0x18] sm:$0xff]  ;;  %v97_v2 = vld [vmem:[#allocation8 + $0x10] sm:$0xff]  ;;  %vm99_vm0 = vcmask 261120   ;;  %s268_s21 = sshll.u32 %s526_s6, 4  ;;  %s269_s21 = int_to_ptr.hbm [resolvable:$true] %s268_s21 }
  0x14   :  { %v94_v1 = vld [vmem:[#allocation7 + $0x18] sm:$0xff]  ;;  %118 = vmatpush.msra.mxu0 %v98_v0  ;;  %v93_v3 = vld [vmem:[#allocation7 + $0x10] sm:$0xff]  ;;  %284 = vmatpush.msra.mxu2 %v98_v0  ;;  %v96_v4 = vld [vmem:[#allocation8 + $0x8] sm:$0xff]  ;;  %vm256_vm9 = vcmask 1041409   ;;  %vm259_vm10 = vcmask 254976  }
  0x15   :  { %147 = vmatpush.msra.mxu1 %v94_v1  ;;  %288 = vmatpush.msra.mxu3 %v94_v1  ;;  %v92_v5 = vld [vmem:[#allocation7 + $0x8] sm:$0xff]  ;;  %v95_v6 = vld [vmem:[#allocation8] sm:$0xff]  ;;  %v89_v8 = vld [vmem:[#allocation5] sm:$0xff] }
  0x16   :  { %119 = vmatpush.msra.mxu0 %v97_v2  ;;  %285 = vmatpush.msra.mxu2 %v97_v2  ;;  %v91_v7 = vld [vmem:[#allocation7] sm:$0xff]  ;;  %v90_v10 = vld [vmem:[#allocation5 + $0x8] sm:$0xff]  ;;  %v497_v11 = vld [vmem:[#allocation2 + $0x8] sm:$0xff] }
  0x17   :  { %148 = vmatpush.msra.mxu1 %v93_v3  ;;  %289 = vmatpush.msra.mxu3 %v93_v3  ;;  %v495_v9 = vld [vmem:[#allocation2] sm:$0xff] }
  0x18   :  { %120 = vmatpush.msra.mxu0 %v96_v4  ;;  %286 = vmatpush.msra.mxu2 %v96_v4  ;;  %v299_v12 = vld [vmem:[%s524_s4] ss:$0 sm:$0xff]  ;;  %s447_s4 = smov [#allocation10]  }
  0x19   :  { %149 = vmatpush.msra.mxu1 %v92_v5  ;;  %290 = vmatpush.msra.mxu3 %v92_v5  ;;  %v300_v19 = vld [vmem:[%s525_s5] ss:$0 sm:$0xff]  ;;  %s266_s5 = sshll.u32 %s447_s4, 4  ;;  %s267_s5 = int_to_ptr.vmem [resolvable:$true] %s266_s5 }
  0x1a   :  { %121 = vmatpush.msra.mxu0 %v95_v6  ;;  %287 = vmatpush.msra.mxu2 %v95_v6 }
  0x1b   :  { %150 = vmatpush.msra.mxu1 %v91_v7  ;;  %280 = vmatmul.msk.f32.vlgmr.msra.gmra.mxu0 %vm99_vm0, %v89_v8 }
  0x1c   :  { %282 = vmatmul.msk.f32.vlgmr.msra.gmra.mxu1 %vm99_vm0, %v495_v9  ;;  %291 = vmatpush.msra.mxu3 %v91_v7 }
  0x1d   :  { %281 = vmatmul.msk.f32.vlgmr.msra.gmra.mxu2 %vm99_vm0, %v90_v10  ;;  %283 = vmatmul.msk.f32.vlgmr.msra.gmra.mxu3 %vm99_vm0, %v497_v11 }
  0x98   :  { %v123_v13 = vpop.f32.mrf.mxu0 }
  0x99   :  { %v152_v14 = vpop.f32.mrf.mxu1 }
  0x9a   :  { %v153_v15 = vadd.f32 %v152_v14, %v123_v13 }
  0x9c   :  { %v162_v16 = vadd.f32 %v299_v12, %v153_v15 }
  0x9e   :  { %301 = vtanh.f32 %v162_v16 }
  0xa0   :  { %v126_v17 = vpop.f32.mrf.mxu2  ;;  %v155_v18 = vpop.f32.mrf.mxu3 }
  0xa1   :  { %v156_v20 = vadd.f32 %v155_v18, %v126_v17 }
  0xa3   :  { %v163_v22 = vadd.f32 %v299_v12, %v156_v20 }
  0xa4   :  { %v302_v21 = vpop.eup %301 }
  0xa5   :  { %v170_v23 = vmul.f32 %v302_v21, %v300_v19  ;;  %303 = vtanh.f32 %v163_v22 }
  0xa7   :  { %v172_v24 = vsel %vm99_vm0, %v170_v23, 0.0 }
  0xa8   :  { %173 = vadd.xlane.f32.xlu0 %v172_v24 }
  0xab   :  { %v304_v25 = vpop.eup %303 }
  0xac   :  { %v171_v26 = vmul.f32 %v304_v25, %v300_v19 }
  0xae   :  { %v175_v27 = vsel %vm99_vm0, %v171_v26, 0.0 }
  0xb0   :  { %176 = vadd.xlane.f32.xlu0 %v175_v27 }
 0x11b   :  { %v174_v28 = vpop.xlane.xlu0 %173 }
 0x11c   :  { %v178_v29 = vrot.slane %v174_v28, 4 }
 0x11e   :  { %v179_v30 = vmax.f32 %v174_v28, %v178_v29 }
 0x120   :  { %v180_v31 = vrot.slane %v179_v30, 2 }
 0x122   :  { %v181_v32 = vmax.f32 %v179_v30, %v180_v31 }
 0x123   :  { %v177_v33 = vpop.xlane.xlu0 %176 }
 0x124   :  { %v182_v34 = vrot.slane %v181_v32, 1  ;;  %v184_v35 = vrot.slane %v177_v33, 4 }
 0x126   :  { %v183_v36 = vmax.f32 %v181_v32, %v182_v34  ;;  %v185_v37 = vmax.f32 %v177_v33, %v184_v35 }
 0x128   :  { %v190_v38 = vsub.f32 %v174_v28, %v183_v36  ;;  %v186_v39 = vrot.slane %v185_v37, 2 }
 0x12a   :  { %v192_v40 = vmul.f32 1.442695, %v190_v38  ;;  %v187_v41 = vmax.f32 %v185_v37, %v186_v39 }
 0x12c   :  { %305 = vpow2.f32 %v192_v40  ;;  %v188_v42 = vrot.slane %v187_v41, 1 }
 0x12e   :  { %v189_v43 = vmax.f32 %v187_v41, %v188_v42 }
 0x130   :  { %v191_v44 = vsub.f32 %v177_v33, %v189_v43 }
 0x132   :  { %v306_v45 = vpop.eup %305  ;;  %v194_v46 = vmul.f32 1.442695, %v191_v44 }
 0x133   :  { %v196_v47 = vrot.slane %v306_v45, 4 }
 0x134   :  { %307 = vpow2.f32 %v194_v46 }
 0x135   :  { %v197_v48 = vadd.f32 %v306_v45, %v196_v47 }
 0x137   :  { %v198_v49 = vrot.slane %v197_v48, 2 }
 0x139   :  { %v199_v50 = vadd.f32 %v198_v49, %v197_v48 }
 0x13a   :  { %v308_v51 = vpop.eup %307 }
 0x13b   :  { %v200_v52 = vrot.slane %v199_v50, 1  ;;  %v202_v53 = vrot.slane %v308_v51, 4 }
 0x13d   :  { %v201_v54 = vadd.f32 %v200_v52, %v199_v50  ;;  %v203_v55 = vadd.f32 %v308_v51, %v202_v53 }
 0x13f   :  { %309 = vrcp.f32 %v201_v54  ;;  %v204_v56 = vrot.slane %v203_v55, 2  ;;  %v219_v63 = vand.u32 2147483648, %v201_v54  ;;  %v217_v1 = vand.u32 2147483647, %v201_v54 }
 0x140   :  { %vm213_vm2 = vweird.f32 %v201_v54 }
 0x141   :  { %v205_v57 = vadd.f32 %v204_v56, %v203_v55  ;;  %v220_v4 = vor.u32 1.1754944e-38, %v219_v63  ;;  %vm218_vm4 = vcmp.eq.f32.partialorder %v217_v1, 8.507059e+37 }
 0x143   :  { %v206_v58 = vrot.slane %v205_v57, 1 }
 0x145   :  { %v310_v59 = vpop.eup %309  ;;  %v207_v60 = vadd.f32 %v206_v58, %v205_v57 }
 0x146   :  { %v209_v61 = vmul.f32 %v310_v59, %v201_v54  ;;  %vm214_vm1 = vweird.f32 %v310_v59 }
 0x147   :  { %311 = vrcp.f32 %v207_v60  ;;  %vm215_vm3 = vmor %vm213_vm2, %vm214_vm1  ;;  %v234_v12 = vand.u32 2147483648, %v207_v60  ;;  %v232_v14 = vand.u32 2147483647, %v207_v60  ;;  %vm228_vm6 = vweird.f32 %v207_v60 }
 0x148   :  { %v210_v62 = vsub.f32 1.0, %v209_v61 }
 0x149   :  { %v235_v18 = vor.u32 1.1754944e-38, %v234_v12  ;;  %vm233_vm8 = vcmp.eq.f32.partialorder %v232_v14, 8.507059e+37 }
 0x14a   :  { %v211_v0 = vmul.f32 %v310_v59, %v210_v62 }
 0x14c   :  { %v212_v2 = vadd.f32 %v310_v59, %v211_v0 }
 0x14d   :  { %v312_v3 = vpop.eup %311 }
 0x14e   :  { %v224_v5 = vmul.f32 %v312_v3, %v207_v60  ;;  %v216_v6 = vsel %vm215_vm3, %v310_v59, %v212_v2  ;;  %vm229_vm5 = vweird.f32 %v312_v3 }
 0x14f   :  { %v221_v7 = vsel %vm218_vm4, %v220_v4, %v216_v6  ;;  %vm230_vm7 = vmor %vm228_vm6, %vm229_vm5 }
 0x150   :  { %v225_v8 = vsub.f32 1.0, %v224_v5  ;;  %v222_v10 = vmul.f32 %v306_v45, %v221_v7 }
 0x152   :  { %v226_v13 = vmul.f32 %v312_v3, %v225_v8  ;;  %v238_v15 = vmul.f32 %v222_v10, %v495_v9 }
 0x154   :  { %v227_v16 = vadd.f32 %v312_v3, %v226_v13  ;;  %v240_v17 = vsel %vm99_vm0, %v238_v15, 0.0 }
 0x155   :  { %v241_v19 = vrot.slane %v240_v17, 4 }
 0x156   :  { %v231_v20 = vsel %vm230_vm7, %v312_v3, %v227_v16 }
 0x157   :  { %v236_v21 = vsel %vm233_vm8, %v235_v18, %v231_v20  ;;  %v242_v22 = vadd.f32 %v241_v19, %v240_v17 }
 0x158   :  { %v237_v23 = vmul.f32 %v308_v51, %v236_v21 }
 0x159   :  { %v243_v25 = vrot.slane %v242_v22, 2 }
 0x15a   :  { %v239_v24 = vmul.f32 %v237_v23, %v497_v11 }
 0x15b   :  { %v244_v28 = vadd.f32 %v243_v25, %v242_v22 }
 0x15c   :  { %v247_v26 = vsel %vm99_vm0, %v239_v24, 0.0 }
 0x15d   :  { %v248_v27 = vrot.slane %v247_v26, 4  ;;  %v245_v30 = vrot.slane %v244_v28, 1 }
 0x15f   :  { %v249_v9 = vadd.f32 %v248_v27, %v247_v26  ;;  %v246_v33 = vadd.f32 %v245_v30, %v244_v28 }
 0x161   :  { %v250_v29 = vrot.slane %v249_v9, 2 }
 0x163   :  { %v251_v31 = vadd.f32 %v250_v29, %v249_v9 }
 0x165   :  { %v252_v32 = vrot.slane %v251_v31, 1 }
 0x167   :  { %v253_v34 = vadd.f32 %v252_v32, %v251_v31 }
 0x169   :  { %v257_v11 = vsel %vm256_vm9, %v253_v34, %v246_v33 }
 0x16a   :  { %260 = vst.msk [vmem:[#allocation10] sm:$0x3] %vm259_vm10, %v257_v11 }
 0x16b   :  { %271 = dma.vmem_to_hbm [thread:$0]  %s267_s5, 32, %s269_s21, [#allocation4]  }
 0x16c   :  { %439 = dma.done.wait [#allocation4], 32  }
 0x16d   :  { %440 = vsyncadd [#allocation4], 4294967264 }
 0x16e   :  { %276 = vsyncpa [#allocation3], 1 }
 0x16f   :  { %277 = vsyncpa [#allocation6], 1 }
 0x170   :  { %278 = vsyncpa [#allocation9], 1 }
 0x171   :  { %279 = vsyncpa [#allocation4], 1 }

</bundles_post_ra>
